<compile_context>
chip_gen: v6e
topology: v6e:2x2x1
jax: 0.10.0
libtpu: 0.0.40
codegen_flags: <defaults>
</compile_context>

<pallas_src>
from functools import partial

import jax
import jax.numpy as jnp
import numpy as np
from jax import lax
from jax.experimental import pallas as pl
from jax.experimental.pallas import tpu as pltpu


def _round_up(x, m):
    return (x + m - 1) // m * m


# ---------------------------------------------------------------------------
# Phase 1: k' = softmax_N(agent @ k^T) (online over N tiles), kv = softmax(k'@v)
# Output: block-diagonal kv of shape (H*A, inner_pad) per batch.
# ---------------------------------------------------------------------------
def _kv_kernel(x_ref, ak_ref, wvt_ref, kv_ref, m_sc, l_sc, acc_sc, *,
               heads, dim_head, agent_num, cdt, approx):
    nt = pl.program_id(1)

    @pl.when(nt == 0)
    def _():
        m_sc[...] = jnp.full(m_sc.shape, -jnp.inf, dtype=m_sc.dtype)
        l_sc[...] = jnp.zeros(l_sc.shape, dtype=l_sc.dtype)
        acc_sc[...] = jnp.zeros(acc_sc.shape, dtype=acc_sc.dtype)

    x = x_ref[0]                                                   # (TN, DIM)
    # k-scores for every head in one MXU op:
    #   s[h*A+a, n] = agent[h][a,:] @ k[h][n,:]  with  A_k = blockdiag(agent) @ Wk
    s = lax.dot_general(ak_ref[...], x, (((1,), (1,)), ((), ())),
                        preferred_element_type=jnp.float32)        # (HA, TN) f32
    v = jnp.dot(x, wvt_ref[...],
                preferred_element_type=jnp.float32)                # (TN, inner) f32

    # online softmax over the N (lane) axis, per (h, a) row
    m_prev = m_sc[...]
    m_new = jnp.maximum(m_prev, jnp.max(s, axis=-1, keepdims=True))  # (HA, 1)
    alpha = jnp.exp(m_prev - m_new)
    p = jnp.exp(s - m_new)                                           # (HA, TN)
    l_sc[...] = alpha * l_sc[...] + jnp.sum(p, axis=-1, keepdims=True)
    acc_sc[...] = alpha * acc_sc[...] + jnp.dot(
        p.astype(cdt), v.astype(cdt), preferred_element_type=jnp.float32)
    m_sc[...] = m_new

    @pl.when(nt == pl.num_programs(1) - 1)
    def _():
        # kv_raw = softmax_N(agent @ k^T) @ v, per head in (A, d) blocks.
        kv_raw = acc_sc[...] * pl.reciprocal(l_sc[...], approx=approx)
        kv_ref[0] = jnp.zeros(kv_ref.shape[1:], dtype=kv_ref.dtype)
        for h in range(heads):
            r0, c0 = h * agent_num, h * dim_head
            blk = kv_raw[r0:r0 + agent_num, c0:c0 + dim_head]        # (A, d)
            # NOTE: the module applies this softmax over dim_head (dim=-1 of
            # (A, d)).  Unusual, but faithfully reproduced — do not "fix".
            blk = blk - jnp.max(blk, axis=-1, keepdims=True)
            e = jnp.exp(blk)
            blk = e / jnp.sum(e, axis=-1, keepdims=True)             # exact
            kv_ref[0, r0:r0 + agent_num, c0:c0 + dim_head] = blk.astype(kv_ref.dtype)


# ---------------------------------------------------------------------------
# Phase 2: q' = softmax_A(scale * q @ agent^T) per head; out = q' @ blockdiag(kv)
# ---------------------------------------------------------------------------
def _out_kernel(x_ref, wqa_ref, kv_ref, o_ref, *, heads, agent_num, cdt, approx):
    ha = heads * agent_num
    x = x_ref[0]                                                    # (TN, DIM)
    # q-scores for every head in one MXU op (scale & agent^T folded into W_qa).
    s = jnp.dot(x, wqa_ref[...],
                preferred_element_type=jnp.float32)                 # (TN, HA) f32

    # per-head softmax over the A-wide column blocks; per-block max / denom are
    # broadcast back with 0/1 column masks (pure VPU, no lane concatenation).
    col = lax.broadcasted_iota(jnp.int32, (1, ha), 1) // agent_num  # (1, HA)
    m_full = jnp.zeros_like(s)
    for h in range(heads):
        m_h = jnp.max(s[:, h * agent_num:(h + 1) * agent_num], axis=-1,
                      keepdims=True)                                 # (TN, 1)
        m_full = m_full + jnp.where(col == h, m_h, 0.0)
    e = jnp.exp(s - m_full)
    d_full = jnp.zeros_like(s)
    for h in range(heads):
        d_h = jnp.sum(e[:, h * agent_num:(h + 1) * agent_num], axis=-1,
                      keepdims=True)                                 # (TN, 1)
        d_full = d_full + jnp.where(col == h, d_h, 0.0)
    p = e * pl.reciprocal(d_full, approx=approx)                     # (TN, HA)

    # Single wide matmul; the block-diagonal kv lands the result directly in
    # 'b n (h d)' layout, and the 128-padded last dim makes the store lane-dense.
    out = jnp.dot(p.astype(cdt), kv_ref[0],
                  preferred_element_type=jnp.float32)                # (TN, INNER_P)
    o_ref[0] = out.astype(o_ref.dtype)


def agent_attention(x, w_qkv, agent, *, heads, dim_head,
                    compute_dtype=jnp.bfloat16, approx_recip=True, tile_n=256):
    """x: (B,N,DIM) f32; w_qkv: (3*H*DH, DIM) [nn.Linear weight]; agent: (H,A,DH).

    compute_dtype=bfloat16 (recommended on v5e/v6e/v7x) casts MXU operands once
    on the host; accumulation and softmax math stay f32.  compute_dtype=None
    keeps full-f32 operands for strict numeric checks.
    """
    b, n, dim = x.shape
    h, dh = heads, dim_head
    a = agent.shape[1]
    inner = h * dh
    ha = h * a
    assert dh == dim // h, "module requires dim_head == dim // heads"
    assert agent.shape == (h, a, dh)
    inner_p = _round_up(inner, 128)          # lane-dense (padded) output width

    # sequence tile: divisor of N, sublane-aligned; else fall back to full N
    tn = tile_n if (tile_n is not None and tile_n <= n and n % tile_n == 0) else n
    if tn % 8 != 0:
        tn = n
    n_tiles = n // tn

    scale = float(dh) ** -0.5
    wq = w_qkv[:inner].astype(jnp.float32) * scale      # fold scale in f32 first
    wk = w_qkv[inner:2 * inner].astype(jnp.float32)
    wv = w_qkv[2 * inner:].astype(jnp.float32)
    agent_f = agent.astype(jnp.float32)

    # block-diagonal agent (HA, inner): block h at rows [hA:(h+1)A], cols [hd:(h+1)d]
    agent_bd = jnp.zeros((ha, inner), jnp.float32)
    for hh in range(h):
        agent_bd = agent_bd.at[hh * a:(hh + 1) * a, hh * dh:(hh + 1) * dh].set(agent_f[hh])

    # host-fused operands (f32 products, one cast to the compute dtype)
    a_k = agent_bd @ wk              # (HA, DIM): k-scores = A_k @ x^T
    w_qa = (agent_bd @ wq).T         # (DIM, HA): q-scores = x @ W_qa
    w_vt = wv.T                      # (DIM, inner): v = x @ W_vt

    cdt = compute_dtype if compute_dtype is not None else jnp.float32
    x_c = x.astype(cdt)
    a_k = a_k.astype(cdt)
    w_qa = w_qa.astype(cdt)
    w_vt = w_vt.astype(cdt)

    # scoped VMEM budget from the actual blocks (double-buffered x/out tiles,
    # resident weights/agent products, scratches and f32 intermediates)
    isz = jnp.dtype(cdt).itemsize
    est = (2 * tn * dim * isz + ha * dim * isz + dim * max(inner, ha) * isz
           + 2 * ha * inner_p * isz + 2 * tn * inner_p * 4
           + ha * (inner + 2) * 4 + (ha * tn + tn * inner) * 4)
    vmem_limit = int(min(64 * 2 ** 20, max(32 * 2 ** 20, 2 * est)))

    # ---- phase 1: agent->token summary kv (reduction over N tiles) ----------
    kv_kernel = partial(_kv_kernel, heads=h, dim_head=dh, agent_num=a,
                        cdt=cdt, approx=approx_recip)
    kv_bd = pl.pallas_call(
        kv_kernel,
        out_shape=jax.ShapeDtypeStruct((b, ha, inner_p), cdt),
        grid_spec=pltpu.PrefetchScalarGridSpec(
            num_scalar_prefetch=0,
            grid=(b, n_tiles),                      # N axis innermost (reduction)
            in_specs=[
                pl.BlockSpec((1, tn, dim), lambda i, t: (i, t, 0)),   # x tile
                pl.BlockSpec((ha, dim), lambda i, t: (0, 0)),         # A_k (resident)
                pl.BlockSpec((dim, inner), lambda i, t: (0, 0)),      # Wv^T (resident)
            ],
            out_specs=pl.BlockSpec((1, ha, inner_p), lambda i, t: (i, 0, 0)),
            scratch_shapes=[
                pltpu.VMEM((ha, 1), jnp.float32),        # running max
                pltpu.VMEM((ha, 1), jnp.float32),        # running denom
                pltpu.VMEM((ha, inner), jnp.float32),    # running numerator
            ]),
        compiler_params=pltpu.CompilerParams(
            dimension_semantics=("parallel", "arbitrary"),
            vmem_limit_bytes=vmem_limit),
    )(x_c, a_k, w_vt)

    # ---- phase 2: token->agent attention + lane-dense output ----------------
    out_kernel = partial(_out_kernel, heads=h, agent_num=a,
                         cdt=cdt, approx=approx_recip)
    out_p = pl.pallas_call(
        out_kernel,
        out_shape=jax.ShapeDtypeStruct((b, n, inner_p), x.dtype),
        grid_spec=pltpu.PrefetchScalarGridSpec(
            num_scalar_prefetch=0,
            grid=(b, n_tiles),
            in_specs=[
                pl.BlockSpec((1, tn, dim), lambda i, t: (i, t, 0)),     # x tile
                pl.BlockSpec((dim, ha), lambda i, t: (0, 0)),           # W_qa (resident)
                pl.BlockSpec((1, ha, inner_p), lambda i, t: (i, 0, 0)), # kv_bd per batch
            ],
            out_specs=pl.BlockSpec((1, tn, inner_p), lambda i, t: (i, t, 0)),
        ),
        compiler_params=pltpu.CompilerParams(
            dimension_semantics=("parallel", "parallel"),
            vmem_limit_bytes=vmem_limit),
    )(x_c, w_qa, kv_bd)

    return out_p[:, :, :inner] if inner_p != inner else out_p


def agent_attention_ref(x, w_qkv, agent_p, *, heads, dim_head):
    """Pure-JAX reference mirroring the PyTorch forward."""
    b, n, dim = x.shape
    h, dh = heads, dim_head
    inner = h * dh
    qkv = x @ w_qkv.T
    q, k, v = jnp.split(qkv, 3, axis=-1)
    rearr = lambda t: t.reshape(b, n, h, dh).transpose(0, 2, 1, 3)
    q, k, v = rearr(q), rearr(k), rearr(v)
    agent = jnp.broadcast_to(agent_p[None], (b, h, agent_p.shape[1], dh))
    q = jnp.einsum('bhnd,bhad->bhna', q, agent) * (float(dh) ** -0.5)
    q = jax.nn.softmax(q, axis=-1)
    k = jnp.einsum('bhad,bhnd->bhan', agent, k)
    k = jax.nn.softmax(k, axis=-1)
    kv = jnp.einsum('bhan,bhnd->bhad', k, v)
    kv = jax.nn.softmax(kv, axis=-1)
    out = jnp.einsum('bhna,bhad->bhnd', q, kv)
    return out.transpose(0, 2, 1, 3).reshape(b, n, inner)


if __name__ == "__main__":
    # Small shapes consistent with the module (dim_head must equal dim // heads).
    B, N, DIM = 2, 64, 32
    HEADS, DIM_HEAD = 4, 8
    AGENT_NUM = 16
    INNER = HEADS * DIM_HEAD

    key = jax.random.PRNGKey(0)
    k_x, k_w, k_a = jax.random.split(key, 3)
    x = jax.random.normal(k_x, (B, N, DIM), dtype=jnp.float32)
    # nn.Linear(dim, inner_dim*3, bias=False).weight -> (3*inner_dim, dim)
    w_qkv = jax.random.normal(k_w, (3 * INNER, DIM), dtype=jnp.float32) * 0.1
    # nn.Parameter(torch.randn(heads, agent_num, dim // heads))
    agent = jax.random.normal(k_a, (HEADS, AGENT_NUM, DIM // HEADS), dtype=jnp.float32)

    ref = agent_attention_ref(x, w_qkv, agent, heads=HEADS, dim_head=DIM_HEAD)

    # f32-operand path, tile_n=32 -> exercises the multi-tile online-softmax
    # reduction of phase 1 (two N tiles).
    out_f32 = jax.block_until_ready(
        agent_attention(x, w_qkv, agent, heads=HEADS, dim_head=DIM_HEAD,
                        compute_dtype=None, tile_n=32))
    np.testing.assert_allclose(np.asarray(out_f32), np.asarray(ref),
                               rtol=5e-3, atol=5e-3)

    # default bf16-operand / f32-accumulate path (recommended on v5e/v6e/v7x).
    out_bf16 = jax.block_until_ready(
        agent_attention(x, w_qkv, agent, heads=HEADS, dim_head=DIM_HEAD))
    np.testing.assert_allclose(np.asarray(out_bf16), np.asarray(ref),
                               rtol=5e-2, atol=5e-2)

    print("KERNEL_OK")
</pallas_src>

<mosaic_0001>
module attributes {stable_mosaic.version = 11 : i64} {
  func.func @_kv_kernel(%arg0: i32, %arg1: i32, %arg2: memref<1x32x32xf32, #tpu.memory_space<vmem>>, %arg3: memref<64x32xf32, #tpu.memory_space<vmem>>, %arg4: memref<32x32xf32, #tpu.memory_space<vmem>>, %arg5: memref<1x64x128xf32, #tpu.memory_space<vmem>>, %arg6: memref<64x1xf32, #tpu.memory_space<vmem>>, %arg7: memref<64x1xf32, #tpu.memory_space<vmem>>, %arg8: memref<64x32xf32, #tpu.memory_space<vmem>>) attributes {dimension_semantics = [#tpu.dimension_semantics<parallel>, #tpu.dimension_semantics<arbitrary>], iteration_bounds = array<i64: 2, 2>, scalar_prefetch = 0 : i64, scratch_operands = 3 : i64, tpu.core_type = #tpu.core_type<tc>, window_params = [{transform_indices = @transform_0, window_bounds = array<i64: 1, 32, 32>}, {pipeline_mode = #tpu.pipeline_mode<synchronous>, transform_indices = @transform_1, window_bounds = array<i64: 64, 32>}, {pipeline_mode = #tpu.pipeline_mode<synchronous>, transform_indices = @transform_2, window_bounds = array<i64: 32, 32>}, {transform_indices = @transform_3, window_bounds = array<i64: 1, 64, 128>}]} {
    %c0_i32 = arith.constant 0 : i32
    %0 = arith.cmpi eq, %arg1, %c0_i32 : i32
    %1 = arith.extui %0 : i1 to i32
    %c0_i32_0 = arith.constant 0 : i32
    %2 = arith.cmpi ne, %1, %c0_i32_0 : i32
    scf.if %2 {
      %cst_24 = arith.constant 0xFF800000 : f32
      %34 = vector.broadcast %cst_24 : f32 to vector<64x1xf32>
      %c0_25 = arith.constant 0 : index
      %c0_26 = arith.constant 0 : index
      %35 = vector.load %arg6[%c0_25, %c0_26] : memref<64x1xf32, #tpu.memory_space<vmem>>, vector<64x1xf32>
      tpu.vector_store %arg6[%c0_25, %c0_26], %34 {strides = array<i32>} : memref<64x1xf32, #tpu.memory_space<vmem>>, vector<64x1xf32>,
      %cst_27 = arith.constant 0.000000e+00 : f32
      %36 = vector.broadcast %cst_27 : f32 to vector<64x1xf32>
      %c0_28 = arith.constant 0 : index
      %c0_29 = arith.constant 0 : index
      %37 = vector.load %arg7[%c0_28, %c0_29] : memref<64x1xf32, #tpu.memory_space<vmem>>, vector<64x1xf32>
      tpu.vector_store %arg7[%c0_28, %c0_29], %36 {strides = array<i32>} : memref<64x1xf32, #tpu.memory_space<vmem>>, vector<64x1xf32>,
      %cst_30 = arith.constant 0.000000e+00 : f32
      %38 = vector.broadcast %cst_30 : f32 to vector<64x32xf32>
      %c0_31 = arith.constant 0 : index
      %c0_32 = arith.constant 0 : index
      %39 = vector.load %arg8[%c0_31, %c0_32] : memref<64x32xf32, #tpu.memory_space<vmem>>, vector<64x32xf32>
      tpu.vector_store %arg8[%c0_31, %c0_32], %38 {strides = array<i32>} : memref<64x32xf32, #tpu.memory_space<vmem>>, vector<64x32xf32>,
    } else {
    }
    %c0 = arith.constant 0 : index
    %c0_1 = arith.constant 0 : index
    %c0_2 = arith.constant 0 : index
    %3 = vector.load %arg2[%c0, %c0_1, %c0_2] : memref<1x32x32xf32, #tpu.memory_space<vmem>>, vector<1x32x32xf32>
    %4 = vector.shape_cast %3 : vector<1x32x32xf32> to vector<32x32xf32>
    %c0_3 = arith.constant 0 : index
    %c0_4 = arith.constant 0 : index
    %5 = vector.load %arg3[%c0_3, %c0_4] : memref<64x32xf32, #tpu.memory_space<vmem>>, vector<64x32xf32>
    %cst = arith.constant dense<0.000000e+00> : vector<64x32xf32>
    %6 = tpu.matmul %5, %4, %cst {dimension_numbers = #tpu.dot_dimension_numbers<[1], [1], [0], [0], [0, 0, 1, 0], [], []>} : vector<64x32xf32>, vector<32x32xf32>, vector<64x32xf32> -> vector<64x32xf32>
    %c0_5 = arith.constant 0 : index
    %c0_6 = arith.constant 0 : index
    %7 = vector.load %arg4[%c0_5, %c0_6] : memref<32x32xf32, #tpu.memory_space<vmem>>, vector<32x32xf32>
    %cst_7 = arith.constant dense<0.000000e+00> : vector<32x32xf32>
    %8 = tpu.matmul %4, %7, %cst_7 {dimension_numbers = #tpu.dot_dimension_numbers<[1], [0], [0], [1], [0, 0, 1, 1], [], []>} : vector<32x32xf32>, vector<32x32xf32>, vector<32x32xf32> -> vector<32x32xf32>
    %c0_8 = arith.constant 0 : index
    %c0_9 = arith.constant 0 : index
    %9 = vector.load %arg6[%c0_8, %c0_9] : memref<64x1xf32, #tpu.memory_space<vmem>>, vector<64x1xf32>
    %cst_10 = arith.constant dense<0xFF800000> : vector<64xf32>
    %10 = vector.multi_reduction <maximumf>, %6, %cst_10 [1] : vector<64x32xf32> to vector<64xf32>
    %11 = vector.shape_cast %10 : vector<64xf32> to vector<64x1xf32>
    %12 = arith.maximumf %9, %11 : vector<64x1xf32>
    %13 = arith.subf %9, %12 : vector<64x1xf32>
    %14 = math.exp %13 : vector<64x1xf32>
    %15 = vector.broadcast %12 : vector<64x1xf32> to vector<64x32xf32>
    %16 = arith.subf %6, %15 : vector<64x32xf32>
    %17 = math.exp %16 : vector<64x32xf32>
    %c0_11 = arith.constant 0 : index
    %c0_12 = arith.constant 0 : index
    %18 = vector.load %arg7[%c0_11, %c0_12] : memref<64x1xf32, #tpu.memory_space<vmem>>, vector<64x1xf32>
    %19 = arith.mulf %14, %18 : vector<64x1xf32>
    %cst_13 = arith.constant dense<0.000000e+00> : vector<64xf32>
    %20 = vector.multi_reduction <add>, %17, %cst_13 [1] : vector<64x32xf32> to vector<64xf32>
    %21 = vector.shape_cast %20 : vector<64xf32> to vector<64x1xf32>
    %22 = arith.addf %19, %21 : vector<64x1xf32>
    %c0_14 = arith.constant 0 : index
    %c0_15 = arith.constant 0 : index
    %23 = vector.load %arg7[%c0_14, %c0_15] : memref<64x1xf32, #tpu.memory_space<vmem>>, vector<64x1xf32>
    tpu.vector_store %arg7[%c0_14, %c0_15], %22 {strides = array<i32>} : memref<64x1xf32, #tpu.memory_space<vmem>>, vector<64x1xf32>,
    %c0_16 = arith.constant 0 : index
    %c0_17 = arith.constant 0 : index
    %24 = vector.load %arg8[%c0_16, %c0_17] : memref<64x32xf32, #tpu.memory_space<vmem>>, vector<64x32xf32>
    %25 = vector.broadcast %14 : vector<64x1xf32> to vector<64x32xf32>
    %26 = arith.mulf %25, %24 : vector<64x32xf32>
    %cst_18 = arith.constant dense<0.000000e+00> : vector<64x32xf32>
    %27 = tpu.matmul %17, %8, %cst_18 {dimension_numbers = #tpu.dot_dimension_numbers<[1], [0], [0], [1], [0, 0, 1, 1], [], []>} : vector<64x32xf32>, vector<32x32xf32>, vector<64x32xf32> -> vector<64x32xf32>
    %28 = arith.addf %26, %27 : vector<64x32xf32>
    %c0_19 = arith.constant 0 : index
    %c0_20 = arith.constant 0 : index
    %29 = vector.load %arg8[%c0_19, %c0_20] : memref<64x32xf32, #tpu.memory_space<vmem>>, vector<64x32xf32>
    tpu.vector_store %arg8[%c0_19, %c0_20], %28 {strides = array<i32>} : memref<64x32xf32, #tpu.memory_space<vmem>>, vector<64x32xf32>,
    %c0_21 = arith.constant 0 : index
    %c0_22 = arith.constant 0 : index
    %30 = vector.load %arg6[%c0_21, %c0_22] : memref<64x1xf32, #tpu.memory_space<vmem>>, vector<64x1xf32>
    tpu.vector_store %arg6[%c0_21, %c0_22], %12 {strides = array<i32>} : memref<64x1xf32, #tpu.memory_space<vmem>>, vector<64x1xf32>,
    %c1_i32 = arith.constant 1 : i32
    %31 = arith.cmpi eq, %arg1, %c1_i32 : i32
    %32 = arith.extui %31 : i1 to i32
    %c0_i32_23 = arith.constant 0 : i32
    %33 = arith.cmpi ne, %32, %c0_i32_23 : i32
    scf.if %33 {
      %c0_24 = arith.constant 0 : index
      %c0_25 = arith.constant 0 : index
      %34 = vector.load %arg8[%c0_24, %c0_25] : memref<64x32xf32, #tpu.memory_space<vmem>>, vector<64x32xf32>
      %c0_26 = arith.constant 0 : index
      %c0_27 = arith.constant 0 : index
      %35 = vector.load %arg7[%c0_26, %c0_27] : memref<64x1xf32, #tpu.memory_space<vmem>>, vector<64x1xf32>
      %36 = tpu.reciprocal %35 {approx = true} : vector<64x1xf32> -> vector<64x1xf32>
      %37 = vector.broadcast %36 : vector<64x1xf32> to vector<64x32xf32>
      %38 = arith.mulf %34, %37 : vector<64x32xf32>
      %cst_28 = arith.constant 0.000000e+00 : f32
      %39 = vector.broadcast %cst_28 : f32 to vector<64x128xf32>
      %c0_29 = arith.constant 0 : index
      %c0_30 = arith.constant 0 : index
      %c0_31 = arith.constant 0 : index
      %40 = vector.load %arg5[%c0_29, %c0_30, %c0_31] : memref<1x64x128xf32, #tpu.memory_space<vmem>>, vector<1x64x128xf32>
      %41 = vector.shape_cast %40 : vector<1x64x128xf32> to vector<64x128xf32>
      %42 = vector.shape_cast %39 : vector<64x128xf32> to vector<1x64x128xf32>
      tpu.vector_store %arg5[%c0_29, %c0_30, %c0_31], %42 {strides = array<i32>} : memref<1x64x128xf32, #tpu.memory_space<vmem>>, vector<1x64x128xf32>,
      %43 = vector.extract_strided_slice %38 {offsets = [0, 0], sizes = [16, 8], strides = [1, 1]} : vector<64x32xf32> to vector<16x8xf32>
      %cst_32 = arith.constant dense<0xFF800000> : vector<16xf32>
      %44 = vector.multi_reduction <maximumf>, %43, %cst_32 [1] : vector<16x8xf32> to vector<16xf32>
      %45 = vector.shape_cast %44 : vector<16xf32> to vector<16x1xf32>
      %46 = vector.broadcast %45 : vector<16x1xf32> to vector<16x8xf32>
      %47 = arith.subf %43, %46 : vector<16x8xf32>
      %48 = math.exp %47 : vector<16x8xf32>
      %cst_33 = arith.constant dense<0.000000e+00> : vector<16xf32>
      %49 = vector.multi_reduction <add>, %48, %cst_33 [1] : vector<16x8xf32> to vector<16xf32>
      %50 = vector.shape_cast %49 : vector<16xf32> to vector<16x1xf32>
      %51 = vector.broadcast %50 : vector<16x1xf32> to vector<16x8xf32>
      %52 = arith.divf %48, %51 : vector<16x8xf32>
      %c0_34 = arith.constant 0 : index
      %c0_35 = arith.constant 0 : index
      %c0_36 = arith.constant 0 : index
      %53 = vector.load %arg5[%c0_34, %c0_35, %c0_36] : memref<1x64x128xf32, #tpu.memory_space<vmem>>, vector<1x16x8xf32>
      %54 = vector.shape_cast %53 : vector<1x16x8xf32> to vector<16x8xf32>
      %55 = vector.shape_cast %52 : vector<16x8xf32> to vector<1x16x8xf32>
      tpu.vector_store %arg5[%c0_34, %c0_35, %c0_36], %55 {strides = array<i32>} : memref<1x64x128xf32, #tpu.memory_space<vmem>>, vector<1x16x8xf32>,
      %56 = vector.extract_strided_slice %38 {offsets = [16, 8], sizes = [16, 8], strides = [1, 1]} : vector<64x32xf32> to vector<16x8xf32>
      %cst_37 = arith.constant dense<0xFF800000> : vector<16xf32>
      %57 = vector.multi_reduction <maximumf>, %56, %cst_37 [1] : vector<16x8xf32> to vector<16xf32>
      %58 = vector.shape_cast %57 : vector<16xf32> to vector<16x1xf32>
      %59 = vector.broadcast %58 : vector<16x1xf32> to vector<16x8xf32>
      %60 = arith.subf %56, %59 : vector<16x8xf32>
      %61 = math.exp %60 : vector<16x8xf32>
      %cst_38 = arith.constant dense<0.000000e+00> : vector<16xf32>
      %62 = vector.multi_reduction <add>, %61, %cst_38 [1] : vector<16x8xf32> to vector<16xf32>
      %63 = vector.shape_cast %62 : vector<16xf32> to vector<16x1xf32>
      %64 = vector.broadcast %63 : vector<16x1xf32> to vector<16x8xf32>
      %65 = arith.divf %61, %64 : vector<16x8xf32>
      %c0_39 = arith.constant 0 : index
      %c16 = arith.constant 16 : index
      %c8 = arith.constant 8 : index
      %66 = vector.load %arg5[%c0_39, %c16, %c8] : memref<1x64x128xf32, #tpu.memory_space<vmem>>, vector<1x16x8xf32>
      %67 = vector.shape_cast %66 : vector<1x16x8xf32> to vector<16x8xf32>
      %68 = vector.shape_cast %65 : vector<16x8xf32> to vector<1x16x8xf32>
      tpu.vector_store %arg5[%c0_39, %c16, %c8], %68 {strides = array<i32>} : memref<1x64x128xf32, #tpu.memory_space<vmem>>, vector<1x16x8xf32>,
      %69 = vector.extract_strided_slice %38 {offsets = [32, 16], sizes = [16, 8], strides = [1, 1]} : vector<64x32xf32> to vector<16x8xf32>
      %cst_40 = arith.constant dense<0xFF800000> : vector<16xf32>
      %70 = vector.multi_reduction <maximumf>, %69, %cst_40 [1] : vector<16x8xf32> to vector<16xf32>
      %71 = vector.shape_cast %70 : vector<16xf32> to vector<16x1xf32>
      %72 = vector.broadcast %71 : vector<16x1xf32> to vector<16x8xf32>
      %73 = arith.subf %69, %72 : vector<16x8xf32>
      %74 = math.exp %73 : vector<16x8xf32>
      %cst_41 = arith.constant dense<0.000000e+00> : vector<16xf32>
      %75 = vector.multi_reduction <add>, %74, %cst_41 [1] : vector<16x8xf32> to vector<16xf32>
      %76 = vector.shape_cast %75 : vector<16xf32> to vector<16x1xf32>
      %77 = vector.broadcast %76 : vector<16x1xf32> to vector<16x8xf32>
      %78 = arith.divf %74, %77 : vector<16x8xf32>
      %c0_42 = arith.constant 0 : index
      %c32 = arith.constant 32 : index
      %c16_43 = arith.constant 16 : index
      %79 = vector.load %arg5[%c0_42, %c32, %c16_43] : memref<1x64x128xf32, #tpu.memory_space<vmem>>, vector<1x16x8xf32>
      %80 = vector.shape_cast %79 : vector<1x16x8xf32> to vector<16x8xf32>
      %81 = vector.shape_cast %78 : vector<16x8xf32> to vector<1x16x8xf32>
      tpu.vector_store %arg5[%c0_42, %c32, %c16_43], %81 {strides = array<i32>} : memref<1x64x128xf32, #tpu.memory_space<vmem>>, vector<1x16x8xf32>,
      %82 = vector.extract_strided_slice %38 {offsets = [48, 24], sizes = [16, 8], strides = [1, 1]} : vector<64x32xf32> to vector<16x8xf32>
      %cst_44 = arith.constant dense<0xFF800000> : vector<16xf32>
      %83 = vector.multi_reduction <maximumf>, %82, %cst_44 [1] : vector<16x8xf32> to vector<16xf32>
      %84 = vector.shape_cast %83 : vector<16xf32> to vector<16x1xf32>
      %85 = vector.broadcast %84 : vector<16x1xf32> to vector<16x8xf32>
      %86 = arith.subf %82, %85 : vector<16x8xf32>
      %87 = math.exp %86 : vector<16x8xf32>
      %cst_45 = arith.constant dense<0.000000e+00> : vector<16xf32>
      %88 = vector.multi_reduction <add>, %87, %cst_45 [1] : vector<16x8xf32> to vector<16xf32>
      %89 = vector.shape_cast %88 : vector<16xf32> to vector<16x1xf32>
      %90 = vector.broadcast %89 : vector<16x1xf32> to vector<16x8xf32>
      %91 = arith.divf %87, %90 : vector<16x8xf32>
      %c0_46 = arith.constant 0 : index
      %c48 = arith.constant 48 : index
      %c24 = arith.constant 24 : index
      %92 = vector.load %arg5[%c0_46, %c48, %c24] : memref<1x64x128xf32, #tpu.memory_space<vmem>>, vector<1x16x8xf32>
      %93 = vector.shape_cast %92 : vector<1x16x8xf32> to vector<16x8xf32>
      %94 = vector.shape_cast %91 : vector<16x8xf32> to vector<1x16x8xf32>
      tpu.vector_store %arg5[%c0_46, %c48, %c24], %94 {strides = array<i32>} : memref<1x64x128xf32, #tpu.memory_space<vmem>>, vector<1x16x8xf32>,
    } else {
    }
    return
  }
  func.func @transform_0(%arg0: i32, %arg1: i32) -> (i32, i32, i32) {
    %c0_i32 = arith.constant 0 : i32
    %c0_i32_0 = arith.constant 0 : i32
    return %arg0, %arg1, %c0_i32 : i32, i32, i32
  }
  func.func @transform_1(%arg0: i32, %arg1: i32) -> (i32, i32) {
    %c0_i32 = arith.constant 0 : i32
    %c0_i32_0 = arith.constant 0 : i32
    %c0_i32_1 = arith.constant 0 : i32
    return %c0_i32, %c0_i32_0 : i32, i32
  }
  func.func @transform_2(%arg0: i32, %arg1: i32) -> (i32, i32) {
    %c0_i32 = arith.constant 0 : i32
    %c0_i32_0 = arith.constant 0 : i32
    %c0_i32_1 = arith.constant 0 : i32
    return %c0_i32, %c0_i32_0 : i32, i32
  }
  func.func @transform_3(%arg0: i32, %arg1: i32) -> (i32, i32, i32) {
    %c0_i32 = arith.constant 0 : i32
    %c0_i32_0 = arith.constant 0 : i32
    %c0_i32_1 = arith.constant 0 : i32
    return %arg0, %c0_i32, %c0_i32_0 : i32, i32, i32
  }
}

</mosaic_0001>

<bundles_post_ra>
// kernel: tpu_custom_call.1
= control target key start
LH: loop header
LB: loop body
LE: loop exit
PB: predicated region body
PF: predicated region fallthrough
CT: control target
= control target key end

     0   :  { %8 = vsyncpa [#allocation6], 0  ;;  %s2007_s0 = inlined_call_operand.vmem [shape: f32[2,64,32], index: 0, kind: input, shape index: {}]   ;;  %s2008_s1 = inlined_call_operand.vmem [shape: f32[64,32], index: 1, kind: input, shape index: {}]   ;;  %s2009_s2 = inlined_call_operand.vmem [shape: f32[32,32], index: 2, kind: input, shape index: {}]   ;;  %s2010_s3 = inlined_call_operand.hbm [shape: f32[2,64,128], index: 3, kind: output, shape index: {}]  }
   0x1   :  { %10 = vsyncpa [#allocation6 + $0x1], 0  ;;  %s1582_s12 = smov 0   ;;  %s1584_s13 = smov 0  }
   0x2   :  { %s1586_s14 = smov 0   ;;  %s1588_s15 = smov 0  }
   0x3   :  { %s1590_s16 = smov 0   ;;  %s1592_s17 = smov 0  }
   0x4   :  { %s1594_s18 = smov 0   ;;  %s1596_s19 = smov 0  }
   0x5 LB: > { %s1165_s20 = sadd.s32 4294967295, %s1549_s19   ;;  %s1166_s21 = sadd.s32 4294967294, %s1549_s19   ;;  %s1549_s19 = sphi %s1596_s19, %s16_s19   ;;  %s1545_s18 = sphi %s1594_s18, %s2019_s18   ;;  %s1541_s17 = sphi %s1592_s17, %s2018_s17   ;;  %s1537_s16 = sphi %s1590_s16, %s2017_s16   ;;  %s1533_s15 = sphi %s1588_s15, %s2016_s15   ;;  %s1529_s14 = sphi %s1586_s14, %s2015_s14   ;;  %s1525_s13 = sphi %s1584_s13, %s2014_s13   ;;  %s1521_s12 = sphi %s1582_s12, %s2013_s12  }
   0x6   : > { %s25_s22 = sadd.s32 1, %s1541_s17  ;;  %s28_s23 = sadd.s32 1, %s1545_s18 }
   0x7   : > { %p26_p0 = scmp.ge.s32.totalorder %s25_s22, 2  ;;  %p115_p1 = scmp.ne.s32.totalorder %s1529_s14, %s1525_s13 }
   0x8   : > { %p116_p2 = scmp.eq.s32.totalorder %s1165_s20, 3  ;;  %p121_p4 = scmp.ne.s32.totalorder %s1525_s13, %s1521_s12 }
   0x9   : > { %s2021_s22 = smov (%p26_p0, %s25_s22), 0  ;;  %s2023_s23 = smov (!%p26_p0, %s28_s23), %s1545_s18 }
   0xa   : > { %p1631_p3 = por %p116_p2, %p115_p1  ;;  %p30_p5 = scmp.ge.s32.totalorder %s2023_s23, 2 }
   0xb   : > { %p122_p6 = scmp.eq.s32.totalorder %s1166_s21, 3  ;;  %p1169_p7 = scmp.ge.s32.totalorder %s1549_s19, 1 }
   0xc   : > { %p159_p8 = scmp.lt.s32.totalorder %s1549_s19, 5  ;;  %s2025_s23 = smov (%p30_p5, %s2023_s23), 0 }
   0xd   : > { %p1641_p9 = por %p122_p6, %p121_p4  ;;  %s102_s26 = ssub.s32 %s1545_s18, %s2025_s23 }
   0xe   : > { %p160_p10 = pnand %p1169_p7, %p159_p8  ;;  %s105_s27 = sadd.s32 1, %s1529_s14 }
   0xf   : > { %p103_p11 = scmp.eq.s32.totalorder %s102_s26, 0  ;;  %s184_s29 = sand.u32 (!%p160_p10), 1, %s1525_s13  }
  0x10   : > { %163 = sbr.rel (%p160_p10) target bundleno = 1368 (0x558), region = 32  ;;  %s1171_s30 = sshll.u32 (!%p160_p10), %s1533_s15, 2 }
  0x11   : > { %s1649_s28 = scalar_select %p103_p11, %s1529_s14, %s105_s27  }
  0x12   : > { %s1170_s4 = sshll.u32 (!%p160_p10), %s184_s29, 6  ;;  %p188_p12 = scmp.lt.s32.totalorder (!%p160_p10), %s1537_s16, 1 }
  0x13   : > { %p190_p13 = scmp.lt.s32.totalorder (!%p160_p10), %s1171_s30, 7  ;;  %s1662_s20 = scalar_lea.vmem (!%p160_p10), [#allocation5], %s1170_s4 }
  0x14   : > { %p1174_p0 = scmp.ne.s32.totalorder (!%p160_p10), %s1533_s15, 0 }
  0x15   : > { %s189_s5 = scalar_select %p188_p12, %s1537_s16, 1 }
  0x16   : > { %s2027_s30 = smov (!%p190_p13, %s1171_s30), 7  ;;  %200 = sbr.rel (%p1174_p0) target bundleno = 40 (0x28), region = 36 }
  0x17   : > { %s1172_s6 = sshll.u32 %s189_s5, 3 }
  0x18   : > { %s193_s7 = sadd.s32 %s1172_s6, %s2027_s30 }
  0x19   : > { %s1173_s8 = sshll.u32 %s193_s7, 3 }
  0x1a   : > { %s1660_s11 = scalar_lea.vmem %s2007_s0, %s1173_s8 }
  0x1b   : > { %vm201_vm0 = vcmask 7168   ;;  %vm218_vm1 = vcmask 261120   ;;  %v1551_v0 = vmov -inf   ;;  %v1552_v1 = vmov 0.0  }
  0x1c   : > { %202 = vst.msk [vmem:[#allocation2] sm:$0xff] %vm201_vm0, %v1551_v0  ;;  %203 = vst.msk [vmem:[#allocation2 + $0x8] sm:$0xff] %vm201_vm0, %v1551_v0 }
  0x1d   : > { %204 = vst.msk [vmem:[#allocation2 + $0x10] sm:$0xff] %vm201_vm0, %v1551_v0  ;;  %205 = vst.msk [vmem:[#allocation2 + $0x18] sm:$0xff] %vm201_vm0, %v1551_v0 }
  0x1e   : > { %206 = vst.msk [vmem:[#allocation2 + $0x20] sm:$0xff] %vm201_vm0, %v1551_v0  ;;  %207 = vst.msk [vmem:[#allocation2 + $0x28] sm:$0xff] %vm201_vm0, %v1551_v0 }
  0x1f   : > { %208 = vst.msk [vmem:[#allocation2 + $0x30] sm:$0xff] %vm201_vm0, %v1551_v0  ;;  %209 = vst.msk [vmem:[#allocation2 + $0x38] sm:$0xff] %vm201_vm0, %v1551_v0 }
  0x20   : > { %210 = vst.msk [vmem:[#allocation3] sm:$0xff] %vm201_vm0, %v1552_v1  ;;  %211 = vst.msk [vmem:[#allocation3 + $0x8] sm:$0xff] %vm201_vm0, %v1552_v1 }
  0x21   : > { %212 = vst.msk [vmem:[#allocation3 + $0x10] sm:$0xff] %vm201_vm0, %v1552_v1  ;;  %213 = vst.msk [vmem:[#allocation3 + $0x18] sm:$0xff] %vm201_vm0, %v1552_v1 }
  0x22   : > { %214 = vst.msk [vmem:[#allocation3 + $0x20] sm:$0xff] %vm201_vm0, %v1552_v1  ;;  %215 = vst.msk [vmem:[#allocation3 + $0x28] sm:$0xff] %vm201_vm0, %v1552_v1 }
  0x23   : > { %216 = vst.msk [vmem:[#allocation3 + $0x30] sm:$0xff] %vm201_vm0, %v1552_v1  ;;  %217 = vst.msk [vmem:[#allocation3 + $0x38] sm:$0xff] %vm201_vm0, %v1552_v1 }
  0x24   : > { %219 = vst.msk [vmem:[#allocation4] sm:$0xff] %vm218_vm1, %v1552_v1  ;;  %220 = vst.msk [vmem:[#allocation4 + $0x8] sm:$0xff] %vm218_vm1, %v1552_v1 }
  0x25   : > { %221 = vst.msk [vmem:[#allocation4 + $0x10] sm:$0xff] %vm218_vm1, %v1552_v1  ;;  %222 = vst.msk [vmem:[#allocation4 + $0x18] sm:$0xff] %vm218_vm1, %v1552_v1 }
  0x26   : > { %223 = vst.msk [vmem:[#allocation4 + $0x20] sm:$0xff] %vm218_vm1, %v1552_v1  ;;  %224 = vst.msk [vmem:[#allocation4 + $0x28] sm:$0xff] %vm218_vm1, %v1552_v1 }
  0x27   : > { %225 = vst.msk [vmem:[#allocation4 + $0x30] sm:$0xff] %vm218_vm1, %v1552_v1  ;;  %226 = vst.msk [vmem:[#allocation4 + $0x38] sm:$0xff] %vm218_vm1, %v1552_v1 }
  0x28 PF: > { %v230_v2 = vld [vmem:[%s1660_s11 + $0x18] sm:$0xff]  ;;  %vm239_vm2 = vcmask 261120   ;;  %v229_v3 = vld [vmem:[%s1660_s11 + $0x10] sm:$0xff]  ;;  %v231_v4 = vld [vmem:[%s2008_s1] sm:$0xff]  ;;  %v1553_v33 = vmov 0   ;;  %vm646_vm3 = vcmask 7168  }
  0x29   : > { %1238 = vmatprep.subr.msk.mxu0 %vm239_vm2, %v230_v2  ;;  %v227_v5 = vld [vmem:[%s1660_s11] sm:$0xff]  ;;  %1246 = vmatprep.mubr.msk.f32.mxu0 %vm239_vm2, %v231_v4  ;;  %v228_v6 = vld [vmem:[%s1660_s11 + $0x8] sm:$0xff]  ;;  %v233_v8 = vld [vmem:[%s2008_s1 + $0x10] sm:$0xff]  ;;  %p1199_p1 = scmp.ne.s32.totalorder %s1533_s15, 1 }
  0x2a   : > { %1239 = vmatpush3.xpose.msk.msra.mxu0 %vm239_vm2, %v230_v2  ;;  %1266 = vmatprep.mubr.msk.f32.mxu1 %vm239_vm2, %v227_v5  ;;  %v232_v7 = vld [vmem:[%s2008_s1 + $0x8] sm:$0xff]  ;;  %v234_v9 = vld [vmem:[%s2008_s1 + $0x18] sm:$0xff]  ;;  %v235_v10 = vld [vmem:[%s2008_s1 + $0x20] sm:$0xff]  ;;  %s1555_s15 = smov (!%p1199_p1), 120   ;;  %s1557_s21 = smov (!%p1199_p1), 112  }
  0x2b   : > { %1240 = vmatprep.subr.msk.mxu0 %vm239_vm2, %v229_v3  ;;  %v236_v11 = vld [vmem:[%s2008_s1 + $0x28] sm:$0xff]  ;;  %v237_v12 = vld [vmem:[%s2008_s1 + $0x30] sm:$0xff]  ;;  %v238_v13 = vld [vmem:[%s2008_s1 + $0x38] sm:$0xff]  ;;  %1373 = vset.pattern.permute.xlu0 %v1553_v33  ;;  %s1558_s26 = smov (!%p1199_p1), 104  }
  0x2c   : > { %v384_v14 = vld [vmem:[%s2009_s2 + $0x18] sm:$0xff]  ;;  %v383_v15 = vld [vmem:[%s2009_s2 + $0x10] sm:$0xff]  ;;  %v382_v16 = vld [vmem:[%s2009_s2 + $0x8] sm:$0xff]  ;;  %1374 = vset.pattern.permute.xlu1 %v1553_v33 }
  0x2d   : > { %1258 = vmatprep.subr.mxu1 %v384_v14  ;;  %v381_v17 = vld [vmem:[%s2009_s2] sm:$0xff]  ;;  %v471_v38 = vld [vmem:[#allocation2 + $0x8] sm:$0xff]  ;;  %v472_v39 = vld [vmem:[#allocation2 + $0x10] sm:$0xff] }
  0x2e   : > { %1241 = vmatpush3.xpose.msk.msra.mxu0 %vm239_vm2, %v229_v3  ;;  %1259 = vmatpush3.msra.mxu1 %v384_v14  ;;  %v470_v35 = vld [vmem:[#allocation2] sm:$0xff]  ;;  %v473_v46 = vld [vmem:[#allocation2 + $0x18] sm:$0xff]  ;;  %v475_v53 = vld [vmem:[#allocation2 + $0x28] sm:$0xff] }
  0x2f   : > { %1242 = vmatprep.subr.msk.mxu0 %vm239_vm2, %v228_v6  ;;  %1260 = vmatprep.subr.mxu1 %v383_v15  ;;  %v474_v47 = vld [vmem:[#allocation2 + $0x20] sm:$0xff]  ;;  %v1784_v54 = vld [vmem:[#allocation2 + $0x30] sm:$0xff]  ;;  %v1791_v0 = vld [vmem:[#allocation2 + $0x38] sm:$0xff] }
  0x30   : > { %1261 = vmatpush3.msra.mxu1 %v383_v15 }
  0x31   : > { %1262 = vmatprep.subr.mxu1 %v382_v16 }
  0x32   : > { %1243 = vmatpush3.xpose.msk.msra.mxu0 %vm239_vm2, %v228_v6  ;;  %1263 = vmatpush3.msra.mxu1 %v382_v16 }
  0x33   : > { %1244 = vmatprep.subr.msk.mxu0 %vm239_vm2, %v227_v5  ;;  %1264 = vmatprep.subr.mxu1 %v381_v17 }
  0x34   : > { %1265 = vmatpush3.msra.mxu1 %v381_v17 }
  0x35   : > { %1267 = vmatmul.mubr.msk.f32.vlgmr.msra.gmra.mxu1 %vm239_vm2, %v228_v6 }
  0x36   : > { %1245 = vmatpush3.xpose.msk.msra.mxu0 %vm239_vm2, %v227_v5  ;;  %1269 = vmatprep.mubr.msk.f32.mxu1 %vm239_vm2, %v229_v3 }
  0x39   : > { %1247 = vmatmul.mubr.msk.f32.vlgmr.msra.gmra.mxu0 %vm239_vm2, %v232_v7  ;;  %1270 = vmatmul.mubr.msk.f32.gmra.mxu1 %vm239_vm2, %v230_v2 }
  0x3a   : > { %1249 = vmatprep.mubr.msk.f32.mxu0 %vm239_vm2, %v233_v8 }
  0x3d   : > { %1250 = vmatmul.mubr.msk.f32.gmra.mxu0 %vm239_vm2, %v234_v9 }
  0x3e   : > { %1252 = vmatprep.mubr.msk.f32.mxu0 %vm239_vm2, %v235_v10 }
  0x41   : > { %1253 = vmatmul.mubr.msk.f32.gmra.mxu0 %vm239_vm2, %v236_v11 }
  0x42   : > { %1255 = vmatprep.mubr.msk.f32.mxu0 %vm239_vm2, %v237_v12 }
  0x45   : > { %1256 = vmatmul.mubr.msk.f32.gmra.mxu0 %vm239_vm2, %v238_v13 }
  0xf5   : > { %v1268_v52 = vpop.f32.mrf.mxu1 }
  0xf7   : > { %v451_v56 = vpop.f32.mrf.mxu1 }
  0xf9   : > { %v1749_v18 = vpop.f32.mrf.mxu0  ;;  %v1271_v63 = vpop.f32.mrf.mxu1 }
  0xfa   : > { %v481_v23 = vsel %vm239_vm2, %v1749_v18, -inf  ;;  %1272 = vmatprep.subr.mxu1 %v1271_v63 }
  0xfb   : > { %v1751_v19 = vpop.f32.mrf.mxu0  ;;  %v461_v3 = vpop.f32.mrf.mxu1  ;;  %1273 = vmatpush3.msra.mxu1 %v1271_v63 }
  0xfc   : > { %v478_v20 = vsel %vm239_vm2, %v1751_v19, -inf  ;;  %1274 = vmatprep.subr.mxu1 %v461_v3 }
  0xfd   : > { %479 = vmax.xlane.f32.xlu0 %v478_v20  ;;  %v1755_v21 = vpop.f32.mrf.mxu0  ;;  %1275 = vmatpush3.msra.mxu1 %v461_v3 }
  0xfe   : > { %v487_v27 = vsel %vm239_vm2, %v1755_v21, -inf  ;;  %1276 = vmatprep.subr.mxu1 %v1268_v52 }
  0xff   : > { %v1757_v22 = vpop.f32.mrf.mxu0  ;;  %1277 = vmatpush3.msra.mxu1 %v1268_v52 }
 0x100   : > { %v484_v24 = vsel %vm239_vm2, %v1757_v22, -inf  ;;  %1278 = vmatprep.subr.mxu1 %v451_v56 }
 0x101   : > { %482 = vmax.xlane.f32.xlu0 %v481_v23  ;;  %485 = vmax.xlane.f32.xlu1 %v484_v24  ;;  %v1763_v25 = vpop.f32.mrf.mxu0 }
 0x102   : > { %v493_v30 = vsel %vm239_vm2, %v1763_v25, -inf  ;;  %1279 = vmatpush3.msra.mxu1 %v451_v56 }
 0x103   : > { %v1765_v26 = vpop.f32.mrf.mxu0 }
 0x104   : > { %v490_v28 = vsel %vm239_vm2, %v1765_v26, -inf }
 0x105   : > { %488 = vmax.xlane.f32.xlu1 %v487_v27  ;;  %491 = vmax.xlane.f32.xlu0 %v490_v28  ;;  %v1771_v29 = vpop.f32.mrf.mxu0 }
 0x106   : > { %v499_v34 = vsel %vm239_vm2, %v1771_v29, -inf }
 0x107   : > { %v1775_v31 = vpop.f32.mrf.mxu0 }
 0x108   : > { %v496_v32 = vsel %vm239_vm2, %v1775_v31, -inf }
 0x109   : > { %494 = vmax.xlane.f32.xlu1 %v493_v30  ;;  %497 = vmax.xlane.f32.xlu0 %v496_v32 }
 0x10d   : > { %500 = vmax.xlane.f32.xlu1 %v499_v34 }
 0x186   : > { %v480_v36 = vpop.xlane.xlu0 %479 }
 0x187   : > { %v502_v37 = vmax.f32 %v470_v35, %v480_v36 }
 0x189   : > { %v510_v40 = vsub.f32 %v470_v35, %v502_v37  ;;  %856 = vst.msk [vmem:[#allocation2] sm:$0xff] %vm646_vm3, %v502_v37  ;;  %536 = vperm.xlu0 %1373, %v502_v37  }
 0x18a   : > { %v483_v41 = vpop.xlane.xlu0 %482  ;;  %v486_v42 = vpop.xlane.xlu1 %485 }
 0x18b   : > { %v518_v43 = vmul.f32 1.442695, %v510_v40  ;;  %v503_v44 = vmax.f32 %v471_v38, %v483_v41  ;;  %v504_v45 = vmax.f32 %v472_v39, %v486_v42 }
 0x18d   : > { %1375 = vpow2.f32 %v518_v43  ;;  %857 = vst.msk [vmem:[#allocation2 + $0x8] sm:$0xff] %vm646_vm3, %v503_v44  ;;  %858 = vst.msk [vmem:[#allocation2 + $0x10] sm:$0xff] %vm646_vm3, %v504_v45  ;;  %541 = vperm.xlu1 %1374, %v503_v44   ;;  %v511_v59 = vsub.f32 %v471_v38, %v503_v44  ;;  %v512_v6 = vsub.f32 %v472_v39, %v504_v45 }
 0x18e   : > { %v489_v48 = vpop.xlane.xlu1 %488  ;;  %v492_v49 = vpop.xlane.xlu0 %491 }
 0x18f   : > { %v505_v50 = vmax.f32 %v473_v46, %v489_v48  ;;  %v506_v51 = vmax.f32 %v474_v47, %v492_v49  ;;  %v520_v5 = vmul.f32 1.442695, %v511_v59  ;;  %v522_v11 = vmul.f32 1.442695, %v512_v6 }
 0x191   : > { %v513_v55 = vsub.f32 %v473_v46, %v505_v50  ;;  %859 = vst.msk [vmem:[#allocation2 + $0x18] sm:$0xff] %vm646_vm3, %v505_v50  ;;  %551 = vperm.xlu1 %1374, %v505_v50   ;;  %860 = vst.msk [vmem:[#allocation2 + $0x20] sm:$0xff] %vm646_vm3, %v506_v51  ;;  %v514_v12 = vsub.f32 %v474_v47, %v506_v51 }
 0x192   : > { %v495_v57 = vpop.xlane.xlu1 %494  ;;  %v498_v58 = vpop.xlane.xlu0 %497 }
 0x193   : > { %v524_v60 = vmul.f32 1.442695, %v513_v55  ;;  %v507_v61 = vmax.f32 %v475_v53, %v495_v57  ;;  %v1789_v62 = vmax.f32 %v1784_v54, %v498_v58  ;;  %v526_v13 = vmul.f32 1.442695, %v514_v12 }
 0x195   : > { %1377 = vpow2.f32 %v524_v60  ;;  %v515_v1 = vsub.f32 %v475_v53, %v507_v61  ;;  %861 = vst.msk [vmem:[#allocation2 + $0x28] sm:$0xff] %vm646_vm3, %v507_v61  ;;  %546 = vperm.xlu1 %1374, %v504_v45   ;;  %v516_v2 = vsub.f32 %v1784_v54, %v1789_v62  ;;  %862 = vst.msk [vmem:[#allocation2 + $0x30] sm:$0xff] %vm646_vm3, %v1789_v62 }
 0x196   : > { %v501_v4 = vpop.xlane.xlu1 %500 }
 0x197   : > { %v528_v7 = vmul.f32 1.442695, %v515_v1  ;;  %v1799_v8 = vmax.f32 %v1791_v0, %v501_v4  ;;  %v530_v59 = vmul.f32 1.442695, %v516_v2  ;;  %v598_v2 = vld [vmem:[#allocation3] sm:$0xff] }
 0x199   : > { %1379 = vpow2.f32 %v528_v7  ;;  %561 = vperm.xlu1 %1374, %v507_v61   ;;  %v517_v9 = vsub.f32 %v1791_v0, %v1799_v8  ;;  %863 = vst.msk [vmem:[#allocation2 + $0x38] sm:$0xff] %vm646_vm3, %v1799_v8  ;;  %v599_v0 = vld [vmem:[#allocation3 + $0x8] sm:$0xff] }
 0x19a   : > { %v1805_v10 = vpop.eup %1375  ;;  %1381 = vpow2.f32 %v520_v5 }
 0x19b   : > { %665 = vperm.xlu0 %1373, %v1805_v10   ;;  %1383 = vpow2.f32 %v522_v11  ;;  %v532_v61 = vmul.f32 1.442695, %v517_v9  ;;  %v606_v6 = vmul.f32 %v1805_v10, %v598_v2 }
 0x19c   : > { %1385 = vpow2.f32 %v526_v13  ;;  %v601_v13 = vld [vmem:[#allocation3 + $0x18] sm:$0xff] }
 0x19d   : > { %556 = vperm.xlu1 %1374, %v506_v51  }
 0x1a1   : > { %566 = vperm.xlu1 %1374, %v1789_v62  }
 0x1a2   : > { %v1809_v14 = vpop.eup %1377 }
 0x1a3   : > { %680 = vperm.xlu0 %1373, %v1809_v14  }
 0x1a5   : > { %571 = vperm.xlu1 %1374, %v1799_v8  }
 0x1a6   : > { %v1813_v15 = vpop.eup %1379 }
 0x1a7   : > { %690 = vperm.xlu0 %1373, %v1813_v15   ;;  %v1816_v16 = vpop.eup %1381 }
 0x1a8   : > { %v1819_v17 = vpop.eup %1383  ;;  %v607_v9 = vmul.f32 %v1816_v16, %v599_v0 }
 0x1a9   : > { %670 = vperm.xlu1 %1374, %v1816_v16   ;;  %v1822_v20 = vpop.eup %1385 }
 0x1ad   : > { %675 = vperm.xlu1 %1374, %v1819_v17  }
 0x1b1   : > { %685 = vperm.xlu1 %1374, %v1822_v20  }
 0x204   : > { %v537_v23 = vpop.permute.xlu0 %536 }
 0x205   : > { %v574_v24 = vsub.f32 %v1751_v19, %v537_v23 }
 0x207   : > { %v582_v27 = vmul.f32 1.442695, %v574_v24  ;;  %v609_v24 = vmul.f32 %v1809_v14, %v601_v13 }
 0x208   : > { %v542_v28 = vpop.permute.xlu1 %541 }
 0x209   : > { %1387 = vpow2.f32 %v582_v27  ;;  %v575_v30 = vsub.f32 %v1749_v18, %v542_v28  ;;  %v600_v28 = vld [vmem:[#allocation3 + $0x10] sm:$0xff] }
 0x20a   : > { %v608_v10 = vmul.f32 %v1819_v17, %v600_v28 }
 0x20b   : > { %v584_v32 = vmul.f32 1.442695, %v575_v30 }
 0x20c   : > { %v552_v33 = vpop.permute.xlu1 %551 }
 0x20d   : > { %1389 = vpow2.f32 %v584_v32  ;;  %v577_v34 = vsub.f32 %v1755_v21, %v552_v33  ;;  %v603_v33 = vld [vmem:[#allocation3 + $0x28] sm:$0xff] }
 0x20e   : > { %v611_v16 = vmul.f32 %v1813_v15, %v603_v33 }
 0x20f   : > { %v588_v35 = vmul.f32 1.442695, %v577_v34 }
 0x210   : > { %v547_v36 = vpop.permute.xlu1 %546 }
 0x211   : > { %1391 = vpow2.f32 %v588_v35  ;;  %v576_v37 = vsub.f32 %v1757_v22, %v547_v36  ;;  %v602_v36 = vld [vmem:[#allocation3 + $0x20] sm:$0xff] }
 0x212   : > { %v610_v14 = vmul.f32 %v1822_v20, %v602_v36 }
 0x213   : > { %v586_v38 = vmul.f32 1.442695, %v576_v37 }
 0x214   : > { %v562_v39 = vpop.permute.xlu1 %561 }
 0x215   : > { %1393 = vpow2.f32 %v586_v38  ;;  %v579_v19 = vsub.f32 %v1763_v25, %v562_v39  ;;  %v604_v39 = vld [vmem:[#allocation3 + $0x30] sm:$0xff] }
 0x216   : > { %v1388_v40 = vpop.eup %1387  ;;  %v666_v4 = vpop.permute.xlu0 %665 }
 0x217   : > { %v592_v41 = vmul.f32 1.442695, %v579_v19  ;;  %1280 = vmatprep.mubr.msk.f32.mxu1 %vm239_vm2, %v1388_v40  ;;  %v614_v18 = vsel %vm239_vm2, %v1388_v40, 0.0 }
 0x218   : > { %v557_v42 = vpop.permute.xlu1 %556  ;;  %615 = vadd.xlane.f32.xlu1 %v614_v18 }
 0x219   : > { %1395 = vpow2.f32 %v592_v41  ;;  %v578_v21 = vsub.f32 %v1765_v26, %v557_v42  ;;  %v605_v41 = vld [vmem:[#allocation3 + $0x38] sm:$0xff] }
 0x21a   : > { %v1390_v43 = vpop.eup %1389 }
 0x21b   : > { %v590_v44 = vmul.f32 1.442695, %v578_v21  ;;  %1281 = vmatmul.mubr.msk.f32.vlgmr.msra.gmra.mxu1 %vm239_vm2, %v1390_v43  ;;  %v617_v22 = vsel %vm239_vm2, %v1390_v43, 0.0  ;;  %v656_v43 = vld [vmem:[#allocation4 + $0x8] sm:$0xff] }
 0x21c   : > { %618 = vadd.xlane.f32.xlu0 %v617_v22  ;;  %v567_v45 = vpop.permute.xlu1 %566 }
 0x21d   : > { %1397 = vpow2.f32 %v590_v44  ;;  %v580_v25 = vsub.f32 %v1775_v31, %v567_v45  ;;  %v655_v44 = vld [vmem:[#allocation4] sm:$0xff] }
 0x21e   : > { %v1392_v46 = vpop.eup %1391  ;;  %v681_v54 = vpop.permute.xlu0 %680  ;;  %v703_v45 = vmul.f32 %v666_v4, %v655_v44 }
 0x21f   : > { %v594_v47 = vmul.f32 1.442695, %v580_v25  ;;  %v623_v48 = vsel %vm239_vm2, %v1392_v46, 0.0 }
 0x220   : > { %v572_v49 = vpop.permute.xlu1 %571  ;;  %624 = vadd.xlane.f32.xlu1 %v623_v48  ;;  %v658_v48 = vld [vmem:[#allocation4 + $0x18] sm:$0xff] }
 0x221   : > { %1399 = vpow2.f32 %v594_v47  ;;  %v581_v26 = vsub.f32 %v1771_v29, %v572_v49  ;;  %v657_v49 = vld [vmem:[#allocation4 + $0x10] sm:$0xff] }
 0x222   : > { %v1394_v50 = vpop.eup %1393  ;;  %v691_v7 = vpop.permute.xlu0 %690 }
 0x223   : > { %v596_v51 = vmul.f32 1.442695, %v581_v26  ;;  %1283 = vmatprep.mubr.msk.f32.mxu1 %vm239_vm2, %v1394_v50  ;;  %v620_v52 = vsel %vm239_vm2, %v1394_v50, 0.0  ;;  %v706_v26 = vmul.f32 %v681_v54, %v658_v48 }
 0x224   : > { %621 = vadd.xlane.f32.xlu0 %v620_v52  ;;  %1284 = vmatmul.mubr.msk.f32.gmra.mxu1 %vm239_vm2, %v1392_v46  ;;  %v671_v3 = vpop.permute.xlu1 %670 }
 0x225   : > { %1401 = vpow2.f32 %v596_v51  ;;  %v704_v22 = vmul.f32 %v671_v3, %v656_v43  ;;  %v661_v3 = vld [vmem:[#allocation4 + $0x30] sm:$0xff] }
 0x226   : > { %v1396_v31 = vpop.eup %1395  ;;  %1403 = vpow2.f32 %v530_v59 }
 0x227   : > { %v629_v53 = vsel %vm239_vm2, %v1396_v31, 0.0  ;;  %1405 = vpow2.f32 %v532_v61  ;;  %v662_v61 = vld [vmem:[#allocation4 + $0x38] sm:$0xff] }
 0x228   : > { %630 = vadd.xlane.f32.xlu1 %v629_v53  ;;  %v676_v5 = vpop.permute.xlu1 %675 }
 0x229   : > { %v705_v51 = vmul.f32 %v676_v5, %v657_v49 }
 0x22a   : > { %v1398_v55 = vpop.eup %1397 }
 0x22b   : > { %1286 = vmatprep.mubr.msk.f32.mxu1 %vm239_vm2, %v1398_v55  ;;  %v626_v56 = vsel %vm239_vm2, %v1398_v55, 0.0  ;;  %v660_v55 = vld [vmem:[#allocation4 + $0x28] sm:$0xff] }
 0x22c   : > { %627 = vadd.xlane.f32.xlu0 %v626_v56  ;;  %1287 = vmatmul.mubr.msk.f32.gmra.mxu1 %vm239_vm2, %v1396_v31  ;;  %v1855_v62 = vpop.permute.xlu1 %685  ;;  %v659_v56 = vld [vmem:[#allocation4 + $0x20] sm:$0xff] }
 0x22e   : > { %v1400_v29 = vpop.eup %1399 }
 0x22f   : > { %1289 = vmatprep.mubr.msk.f32.mxu1 %vm239_vm2, %v1400_v29  ;;  %v632_v57 = vsel %vm239_vm2, %v1400_v29, 0.0  ;;  %v708_v29 = vmul.f32 %v691_v7, %v660_v55 }
 0x230   : > { %633 = vadd.xlane.f32.xlu0 %v632_v57 }
 0x232   : > { %v1402_v58 = vpop.eup %1401 }
 0x233   : > { %1290 = vmatmul.mubr.msk.f32.gmra.mxu1 %vm239_vm2, %v1402_v58  ;;  %v635_v60 = vsel %vm239_vm2, %v1402_v58, 0.0  ;;  %v1404_v63 = vpop.eup %1403  ;;  %v707_v58 = vmul.f32 %v1855_v62, %v659_v56 }
 0x234   : > { %636 = vadd.xlane.f32.xlu1 %v635_v60  ;;  %v1406_v1 = vpop.eup %1405  ;;  %v612_v17 = vmul.f32 %v1404_v63, %v604_v39 }
 0x235   : > { %v613_v42 = vmul.f32 %v1406_v1, %v605_v41 }
 0x245   : > { %695 = vperm.xlu1 %1374, %v1404_v63  }
 0x246   : > { %700 = vperm.xlu0 %1373, %v1406_v1  }
 0x2a1   : > { %v616_v11 = vpop.xlane.xlu1 %615 }
 0x2a2   : > { %v638_v8 = vadd.f32 %v616_v11, %v606_v6 }
 0x2a4   : > { %647 = vst.msk [vmem:[#allocation3] sm:$0xff] %vm646_vm3, %v638_v8 }
 0x2a5   : > { %v619_v12 = vpop.xlane.xlu0 %618 }
 0x2a6   : > { %v639_v23 = vadd.f32 %v619_v12, %v607_v9 }
 0x2a8   : > { %648 = vst.msk [vmem:[#allocation3 + $0x8] sm:$0xff] %vm646_vm3, %v639_v23 }
 0x2a9   : > { %v625_v27 = vpop.xlane.xlu1 %624 }
 0x2aa   : > { %v641_v30 = vadd.f32 %v625_v27, %v609_v24 }
 0x2ac   : > { %650 = vst.msk [vmem:[#allocation3 + $0x18] sm:$0xff] %vm646_vm3, %v641_v30 }
 0x2ad   : > { %v622_v32 = vpop.xlane.xlu0 %621 }
 0x2ae   : > { %v640_v34 = vadd.f32 %v622_v32, %v608_v10 }
 0x2b0   : > { %649 = vst.msk [vmem:[#allocation3 + $0x10] sm:$0xff] %vm646_vm3, %v640_v34 }
 0x2b1   : > { %v631_v35 = vpop.xlane.xlu1 %630 }
 0x2b2   : > { %v643_v37 = vadd.f32 %v631_v35, %v611_v16 }
 0x2b4   : > { %652 = vst.msk [vmem:[#allocation3 + $0x28] sm:$0xff] %vm646_vm3, %v643_v37 }
 0x2b5   : > { %v628_v38 = vpop.xlane.xlu0 %627 }
 0x2b6   : > { %v642_v19 = vadd.f32 %v628_v38, %v610_v14 }
 0x2b8   : > { %651 = vst.msk [vmem:[#allocation3 + $0x20] sm:$0xff] %vm646_vm3, %v642_v19 }
 0x2b9   : > { %v634_v40 = vpop.xlane.xlu0 %633 }
 0x2ba   : > { %v644_v18 = vadd.f32 %v634_v40, %v612_v17 }
 0x2bc   : > { %653 = vst.msk [vmem:[#allocation3 + $0x30] sm:$0xff] %vm646_vm3, %v644_v18 }
 0x2bd   : > { %v637_v15 = vpop.xlane.xlu1 %636 }
 0x2be   : > { %v645_v21 = vadd.f32 %v637_v15, %v613_v42 }
 0x2c0   : > { %654 = vst.msk [vmem:[#allocation3 + $0x38] sm:$0xff] %vm646_vm3, %v645_v21 }
 0x2c1   : > { %v701_v63 = vpop.permute.xlu0 %700  ;;  %v696_v4 = vpop.permute.xlu1 %695 }
 0x2c2   : > { %v710_v5 = vmul.f32 %v701_v63, %v662_v61  ;;  %v709_v2 = vmul.f32 %v696_v4, %v661_v3 }
 0x2db   : > { %v1282_v20 = vpop.f32.mrf.mxu1 }
 0x2dc   : > { %v841_v25 = vadd.f32 %v1282_v20, %v704_v22 }
 0x2dd   : > { %v801_v46 = vpop.f32.mrf.mxu1 }
 0x2de   : > { %849 = vst.msk [vmem:[#allocation4 + $0x8] sm:$0xff] %vm239_vm2, %v841_v25  ;;  %v840_v47 = vadd.f32 %v801_v46, %v703_v45 }
 0x2e0   : > { %848 = vst.msk [vmem:[#allocation4] sm:$0xff] %vm239_vm2, %v840_v47 }
 0x2e4   : > { %v1285_v50 = vpop.f32.mrf.mxu1 }
 0x2e5   : > { %v843_v52 = vadd.f32 %v1285_v50, %v706_v26 }
 0x2e6   : > { %v811_v31 = vpop.f32.mrf.mxu1 }
 0x2e7   : > { %851 = vst.msk [vmem:[#allocation4 + $0x18] sm:$0xff] %vm239_vm2, %v843_v52  ;;  %v842_v53 = vadd.f32 %v811_v31, %v705_v51 }
 0x2e9   : > { %850 = vst.msk [vmem:[#allocation4 + $0x10] sm:$0xff] %vm239_vm2, %v842_v53 }
 0x2ec   : > { %v1288_v57 = vpop.f32.mrf.mxu1 }
 0x2ed   : > { %v845_v59 = vadd.f32 %v1288_v57, %v708_v29 }
 0x2ee   : > { %v821_v60 = vpop.f32.mrf.mxu1 }
 0x2ef   : > { %853 = vst.msk [vmem:[#allocation4 + $0x28] sm:$0xff] %vm239_vm2, %v845_v59  ;;  %v844_v1 = vadd.f32 %v821_v60, %v707_v58 }
 0x2f1   : > { %852 = vst.msk [vmem:[#allocation4 + $0x20] sm:$0xff] %vm239_vm2, %v844_v1 }
 0x2f3   : > { %v1291_v54 = vpop.f32.mrf.mxu1 }
 0x2f4   : > { %v847_v6 = vadd.f32 %v1291_v54, %v710_v5  ;;  %867 = sbr.rel (%p1199_p1) target bundleno = 1344 (0x540), region = 40 }
 0x2f5   : > { %v831_v11 = vpop.f32.mrf.mxu1 }
 0x2f6   : > { %855 = vst.msk [vmem:[#allocation4 + $0x38] sm:$0xff] %vm239_vm2, %v847_v6  ;;  %v846_v7 = vadd.f32 %v831_v11, %v709_v2 }
 0x2f8   : > { %854 = vst.msk [vmem:[#allocation4 + $0x30] sm:$0xff] %vm239_vm2, %v846_v7 }
 0x2f9   : > { %v880_v62 = vld [vmem:[#allocation3 + $0x20] sm:$0xff]  ;;  %v878_v0 = vld [vmem:[#allocation3 + $0x10] sm:$0xff]  ;;  %v881_v8 = vld [vmem:[#allocation3 + $0x28] sm:$0xff]  ;;  %v1554_v9 = vmov 0   ;;  %vm973_vm4 = vcmask 130112   ;;  %vm1006_vm5 = vcmask 195712  }
 0x2fa   : > { %1408 = vset.pattern.permute.xlu1 %v1554_v9  ;;  %1407 = vset.pattern.permute.xlu0 %v1554_v9  ;;  %1409 = vrcp.f32 %v880_v62  ;;  %v879_v12 = vld [vmem:[#allocation3 + $0x18] sm:$0xff]  ;;  %v882_v23 = vld [vmem:[#allocation3 + $0x30] sm:$0xff]  ;;  %v877_v24 = vld [vmem:[#allocation3 + $0x8] sm:$0xff]  ;;  %vm1039_vm6 = vcmask 261312   ;;  %vm948_vm7 = vcmask 64512  }
 0x2fb   : > { %1411 = vrcp.f32 %v878_v0  ;;  %v883_v13 = vld [vmem:[#allocation3 + $0x38] sm:$0xff]  ;;  %v876_v27 = vld [vmem:[#allocation3] sm:$0xff]  ;;  %v870_v37 = vld [vmem:[#allocation4 + $0x10] sm:$0xff] }
 0x2fc   : > { %1413 = vrcp.f32 %v881_v8  ;;  %v872_v36 = vld [vmem:[#allocation4 + $0x20] sm:$0xff]  ;;  %v871_v17 = vld [vmem:[#allocation4 + $0x18] sm:$0xff]  ;;  %v873_v18 = vld [vmem:[#allocation4 + $0x28] sm:$0xff] }
 0x2fd   : > { %1415 = vrcp.f32 %v879_v12  ;;  %v875_v45 = vld [vmem:[#allocation4 + $0x38] sm:$0xff]  ;;  %v868_v47 = vld [vmem:[#allocation4] sm:$0xff]  ;;  %v869_v51 = vld [vmem:[#allocation4 + $0x8] sm:$0xff]  ;;  %v1556_v12 = vmov 0.0  }
 0x2fe   : > { %1417 = vrcp.f32 %v883_v13  ;;  %940 = vst [vmem:[%s1662_s20] sm:$0xff] %v1556_v12  ;;  %941 = vst [vmem:[%s1662_s20 + $0x8] sm:$0xff] %v1556_v12 }
 0x2ff   : > { %1419 = vrcp.f32 %v882_v23  ;;  %v874_v43 = vld [vmem:[#allocation4 + $0x30] sm:$0xff]  ;;  %942 = vst [vmem:[%s1662_s20 + $0x10] sm:$0xff] %v1556_v12  ;;  %943 = vst [vmem:[%s1662_s20 + $0x18] sm:$0xff] %v1556_v12 }
 0x300   : > { %1421 = vrcp.f32 %v877_v24  ;;  %944 = vst [vmem:[%s1662_s20 + $0x20] sm:$0xff] %v1556_v12  ;;  %945 = vst [vmem:[%s1662_s20 + $0x28] sm:$0xff] %v1556_v12 }
 0x301   : > { %1423 = vrcp.f32 %v876_v27  ;;  %946 = vst [vmem:[%s1662_s20 + $0x30] sm:$0xff] %v1556_v12  ;;  %947 = vst [vmem:[%s1662_s20 + $0x38] sm:$0xff] %v1556_v12 }
 0x307   : > { %v1410_v28 = vpop.eup %1409 }
 0x308   : > { %v1412_v30 = vpop.eup %1411  ;;  %914 = vperm.xlu1 %1408, %v1410_v28  }
 0x309   : > { %v1414_v10 = vpop.eup %1413  ;;  %904 = vperm.xlu0 %1407, %v1412_v30  }
 0x30a   : > { %v1416_v32 = vpop.eup %1415 }
 0x30b   : > { %v1418_v33 = vpop.eup %1417 }
 0x30c   : > { %919 = vperm.xlu1 %1408, %v1414_v10   ;;  %v1420_v34 = vpop.eup %1419 }
 0x30d   : > { %909 = vperm.xlu0 %1407, %v1416_v32   ;;  %v1422_v16 = vpop.eup %1421 }
 0x30e   : > { %v1424_v35 = vpop.eup %1423 }
 0x310   : > { %929 = vperm.xlu1 %1408, %v1418_v33  }
 0x311   : > { %924 = vperm.xlu0 %1407, %v1420_v34  }
 0x314   : > { %899 = vperm.xlu1 %1408, %v1422_v16  }
 0x315   : > { %894 = vperm.xlu0 %1407, %v1424_v35  }
 0x383   : > { %v915_v14 = vpop.permute.xlu1 %914 }
 0x384   : > { %v905_v38 = vpop.permute.xlu0 %904  ;;  %v936_v39 = vmul.f32 %v915_v14, %v872_v36 }
 0x385   : > { %v934_v19 = vmul.f32 %v905_v38, %v870_v37 }
 0x386   : > { %v1007_v21 = vsel %vm1006_vm5, %v936_v39, -inf }
 0x387   : > { %v920_v40 = vpop.permute.xlu1 %919  ;;  %v974_v41 = vsel %vm973_vm4, %v934_v19, -inf }
 0x388   : > { %v910_v42 = vpop.permute.xlu0 %909  ;;  %975 = vmax.xlane.f32.xlu0 %v974_v41  ;;  %v937_v44 = vmul.f32 %v920_v40, %v873_v18 }
 0x389   : > { %v935_v15 = vmul.f32 %v910_v42, %v871_v17 }
 0x38a   : > { %v1010_v26 = vsel %vm1006_vm5, %v937_v44, -inf }
 0x38b   : > { %v930_v22 = vpop.permute.xlu1 %929  ;;  %v977_v20 = vsel %vm973_vm4, %v935_v15, -inf }
 0x38c   : > { %v925_v25 = vpop.permute.xlu0 %924  ;;  %978 = vmax.xlane.f32.xlu1 %v977_v20  ;;  %1008 = vmax.xlane.f32.xlu0 %v1007_v21  ;;  %v939_v48 = vmul.f32 %v930_v22, %v875_v45 }
 0x38d   : > { %v938_v46 = vmul.f32 %v925_v25, %v874_v43 }
 0x38e   : > { %v1043_v55 = vsel %vm1039_vm6, %v939_v48, -inf }
 0x38f   : > { %v1040_v49 = vsel %vm1039_vm6, %v938_v46, -inf  ;;  %v900_v50 = vpop.permute.xlu1 %899 }
 0x390   : > { %v895_v52 = vpop.permute.xlu0 %894  ;;  %1041 = vmax.xlane.f32.xlu1 %v1040_v49  ;;  %1011 = vmax.xlane.f32.xlu0 %v1010_v26  ;;  %v933_v53 = vmul.f32 %v900_v50, %v869_v51 }
 0x391   : > { %v932_v31 = vmul.f32 %v895_v52, %v868_v47 }
 0x392   : > { %v952_v29 = vsel %vm948_vm7, %v933_v53, -inf }
 0x393   : > { %v949_v56 = vsel %vm948_vm7, %v932_v31, -inf }
 0x394   : > { %1044 = vmax.xlane.f32.xlu0 %v1043_v55  ;;  %950 = vmax.xlane.f32.xlu1 %v949_v56 }
 0x398   : > { %953 = vmax.xlane.f32.xlu0 %v952_v29 }
 0x411   : > { %v976_v57 = vpop.xlane.xlu0 %975 }
 0x412   : > { %v980_v58 = vsub.f32 %v934_v19, %v976_v57 }
 0x414   : > { %v982_v59 = vmul.f32 1.442695, %v980_v58 }
 0x415   : > { %v979_v60 = vpop.xlane.xlu1 %978  ;;  %v1009_v61 = vpop.xlane.xlu0 %1008 }
 0x416   : > { %1425 = vpow2.f32 %v982_v59  ;;  %v981_v63 = vsub.f32 %v935_v15, %v979_v60  ;;  %v1013_v1 = vsub.f32 %v936_v39, %v1009_v61 }
 0x418   : > { %v984_v3 = vmul.f32 1.442695, %v981_v63  ;;  %v1015_v4 = vmul.f32 1.442695, %v1013_v1 }
 0x419   : > { %v1042_v5 = vpop.xlane.xlu1 %1041  ;;  %v1012_v54 = vpop.xlane.xlu0 %1011 }
 0x41a   : > { %1427 = vpow2.f32 %v984_v3  ;;  %v1046_v2 = vsub.f32 %v938_v46, %v1042_v5  ;;  %v1014_v6 = vsub.f32 %v937_v44, %v1012_v54 }
 0x41b   : > { %1429 = vpow2.f32 %v1015_v4 }
 0x41c   : > { %v1048_v11 = vmul.f32 1.442695, %v1046_v2  ;;  %v1017_v7 = vmul.f32 1.442695, %v1014_v6 }
 0x41d   : > { %v1045_v62 = vpop.xlane.xlu0 %1044  ;;  %v951_v30 = vpop.xlane.xlu1 %950 }
 0x41e   : > { %1431 = vpow2.f32 %v1048_v11  ;;  %v1047_v0 = vsub.f32 %v939_v48, %v1045_v62  ;;  %v955_v10 = vsub.f32 %v932_v31, %v951_v30 }
 0x41f   : > { %1433 = vpow2.f32 %v1017_v7 }
 0x420   : > { %v1050_v8 = vmul.f32 1.442695, %v1047_v0  ;;  %v957_v32 = vmul.f32 1.442695, %v955_v10 }
 0x421   : > { %v954_v33 = vpop.xlane.xlu0 %953 }
 0x422   : > { %1435 = vpow2.f32 %v1050_v8  ;;  %v956_v34 = vsub.f32 %v933_v53, %v954_v33 }
 0x423   : > { %v1889_v9 = vpop.eup %1425  ;;  %1437 = vpow2.f32 %v957_v32 }
 0x424   : > { %988 = vrot.lane.b32.xlu1 %v1889_v9, %s1555_s15  ;;  %v959_v16 = vmul.f32 1.442695, %v956_v34 }
 0x426   : > { %1439 = vpow2.f32 %v959_v16 }
 0x427   : > { %v1900_v13 = vpop.eup %1427 }
 0x428   : > { %v1902_v23 = vpop.eup %1429  ;;  %990 = vrot.lane.b32.xlu0 %v1900_v13, %s1555_s15 }
 0x429   : > { %1021 = vrot.lane.b32.xlu1 %v1902_v23, %s1557_s21 }
 0x42b   : > { %v1906_v24 = vpop.eup %1431 }
 0x42c   : > { %v1908_v27 = vpop.eup %1433  ;;  %1054 = vrot.lane.b32.xlu0 %v1906_v24, %s1558_s26 }
 0x42d   : > { %1023 = vrot.lane.b32.xlu1 %v1908_v27, %s1557_s21 }
 0x42f   : > { %v1912_v28 = vpop.eup %1435 }
 0x430   : > { %v1438_v35 = vpop.eup %1437 }
 0x431   : > { %1056 = vrot.lane.b32.xlu1 %v1912_v28, %s1558_s26  ;;  %v961_v36 = vsel %vm948_vm7, %v1438_v35, 0.0 }
 0x433   : > { %v1440_v37 = vpop.eup %1439 }
 0x434   : > { %v964_v14 = vsel %vm948_vm7, %v1440_v37, 0.0 }
 0x44b   : > { %962 = vadd.xlane.f32.xlu0 %v961_v36 }
 0x455   : > { %965 = vadd.xlane.f32.xlu1 %v964_v14 }
 0x496   : > { %v989_v38 = vpop.permute.xlu1 %988 }
 0x497   : > { %v994_v39 = vsel %vm948_vm7, %v989_v38, 0.0 }
 0x498   : > { %995 = vadd.xlane.f32.xlu0 %v994_v39 }
 0x49a   : > { %v991_v19 = vpop.permute.xlu0 %990 }
 0x49b   : > { %v1022_v17 = vpop.permute.xlu1 %1021  ;;  %v997_v40 = vsel %vm948_vm7, %v991_v19, 0.0 }
 0x49c   : > { %998 = vadd.xlane.f32.xlu0 %v997_v40  ;;  %v1027_v41 = vsel %vm948_vm7, %v1022_v17, 0.0 }
 0x49d   : > { %1028 = vadd.xlane.f32.xlu1 %v1027_v41 }
 0x49e   : > { %v1055_v18 = vpop.permute.xlu0 %1054 }
 0x49f   : > { %v1024_v42 = vpop.permute.xlu1 %1023  ;;  %v1060_v15 = vsel %vm948_vm7, %v1055_v18, 0.0 }
 0x4a0   : > { %v1030_v21 = vsel %vm948_vm7, %v1024_v42, 0.0 }
 0x4a1   : > { %1061 = vadd.xlane.f32.xlu1 %v1060_v15  ;;  %1031 = vadd.xlane.f32.xlu0 %v1030_v21 }
 0x4a3   : > { %v1057_v43 = vpop.permute.xlu1 %1056 }
 0x4a4   : > { %v1063_v44 = vsel %vm948_vm7, %v1057_v43, 0.0 }
 0x4a5   : > { %1064 = vadd.xlane.f32.xlu0 %v1063_v44 }
 0x4d4   : > { %v963_v22 = vpop.xlane.xlu0 %962 }
 0x4d5   : > { %1441 = vrcp.f32 %v963_v22 }
 0x4de   : > { %v966_v20 = vpop.xlane.xlu1 %965 }
 0x4df   : > { %1443 = vrcp.f32 %v966_v20 }
 0x4e2   : > { %v1442_v45 = vpop.eup %1441 }
 0x4e3   : > { %v968_v25 = vmul.f32 %v1442_v45, %v1438_v35 }
 0x4e5   : > { %971 = vst.msk [vmem:[%s1662_s20] sm:$0xff] %vm948_vm7, %v968_v25 }
 0x4ec   : > { %v1444_v46 = vpop.eup %1443 }
 0x4ed   : > { %v970_v47 = vmul.f32 %v1444_v46, %v1440_v37 }
 0x4ef   : > { %972 = vst.msk [vmem:[%s1662_s20 + $0x8] sm:$0xff] %vm948_vm7, %v970_v47 }
 0x521   : > { %v996_v48 = vpop.xlane.xlu0 %995 }
 0x522   : > { %1445 = vrcp.f32 %v996_v48 }
 0x525   : > { %v999_v49 = vpop.xlane.xlu0 %998 }
 0x526   : > { %1447 = vrcp.f32 %v999_v49  ;;  %v1029_v26 = vpop.xlane.xlu1 %1028 }
 0x527   : > { %1449 = vrcp.f32 %v1029_v26 }
 0x52a   : > { %v1032_v50 = vpop.xlane.xlu0 %1031  ;;  %v1062_v51 = vpop.xlane.xlu1 %1061 }
 0x52b   : > { %1451 = vrcp.f32 %v1032_v50 }
 0x52c   : > { %1453 = vrcp.f32 %v1062_v51 }
 0x52e   : > { %v1065_v52 = vpop.xlane.xlu0 %1064 }
 0x52f   : > { %v1446_v31 = vpop.eup %1445  ;;  %1455 = vrcp.f32 %v1065_v52 }
 0x530   : > { %v1001_v53 = vmul.f32 %v1446_v31, %v1889_v9 }
 0x532   : > { %1004 = vst.msk [vmem:[%s1662_s20 + $0x10] sm:$0xff] %vm973_vm4, %v1001_v53 }
 0x533   : > { %v1448_v55 = vpop.eup %1447 }
 0x534   : > { %v1450_v56 = vpop.eup %1449  ;;  %v1003_v29 = vmul.f32 %v1448_v55, %v1900_v13 }
 0x535   : > { %v1034_v57 = vmul.f32 %v1450_v56, %v1902_v23 }
 0x536   : > { %1005 = vst.msk [vmem:[%s1662_s20 + $0x18] sm:$0xff] %vm973_vm4, %v1003_v29 }
 0x537   : > { %1037 = vst.msk [vmem:[%s1662_s20 + $0x20] sm:$0xff] %vm1006_vm5, %v1034_v57 }
 0x538   : > { %v1452_v58 = vpop.eup %1451 }
 0x539   : > { %v1454_v59 = vpop.eup %1453  ;;  %v1036_v60 = vmul.f32 %v1452_v58, %v1908_v27 }
 0x53a   : > { %v1067_v61 = vmul.f32 %v1454_v59, %v1906_v24 }
 0x53b   : > { %1038 = vst.msk [vmem:[%s1662_s20 + $0x28] sm:$0xff] %vm1006_vm5, %v1036_v60 }
 0x53c   : > { %v1456_v63 = vpop.eup %1455  ;;  %1070 = vst.msk [vmem:[%s1662_s20 + $0x30] sm:$0xff] %vm1039_vm6, %v1067_v61 }
 0x53d   : > { %v1069_v1 = vmul.f32 %v1456_v63, %v1912_v28 }
 0x53f   : > { %1071 = vst.msk [vmem:[%s1662_s20 + $0x38] sm:$0xff] %vm1039_vm6, %v1069_v1 }
 0x540 PF: > { %s1205_s27 = sshll.u32 %s1537_s16, 10  ;;  %s1086_s6 = sshll.u32 %s1662_s20, 4  ;;  %s1952_s6 = int_to_ptr.vmem [resolvable:$true] %s1086_s6 }
 0x541   : > { %s1949_s5 = scalar_lea.hbm %s2010_s3, %s1205_s27  ;;  %s1956_s7 = scalar_lea.sflag [#allocation6], %s184_s29 }
 0x542   : > { %s1457_s8 = scalar_lea.vmem %s1952_s6, 1024  ;;  %s1559_s16 = smov [#allocation5]  }
 0x543   : > { %p1458_p2 = scmp.ne.s32.totalorder %s1952_s6, %s1457_s8  ;;  %s1461_s9 = sshll.u32 %s1559_s16, 4  ;;  %s1462_s9 = int_to_ptr.vmem [resolvable:$false] %s1461_s9 }
 0x544   : > { %s1463_s10 = scalar_lea.vmem %s1462_s9, 2048  ;;  %p1464_p6 = scmp.lt.s32.totalorder %s1952_s6, %s1462_s9 }
 0x545   : > { %p1459_p4 = pnand %p1458_p2, %p1631_p3  ;;  %p1465_p7 = scmp.lt.s32.totalorder %s1463_s10, %s1457_s8 }
 0x547   : > { %p1460_p5 = pneg %p1459_p4  ;;  %p1466_p8 = por %p1465_p7, %p1464_p6 }
 0x549   : > { %p1467_p10 = pnand %p1466_p8, %p1460_p5 }
 0x54b   : > { %1470 = shalt.err (!%p1467_p10)
}
 0x54c   : > { %s1471_s29 = scalar_lea.hbm %s1949_s5, 1024  ;;  %s1475_s15 = scalar_lea.hbm %s2010_s3, 2048 }
 0x54d   : > { %p1472_p11 = scmp.ne.s32.totalorder %s1949_s5, %s1471_s29  ;;  %p1476_p0 = scmp.lt.s32.totalorder %s1949_s5, %s2010_s3 }
 0x54e   : > { %p1477_p1 = scmp.lt.s32.totalorder %s1475_s15, %s1471_s29 }
 0x54f   : > { %p1473_p12 = pnand %p1472_p11, %p1631_p3 }
 0x550   : > { %p1478_p2 = por %p1477_p1, %p1476_p0 }
 0x551   : > { %p1474_p13 = pneg %p1473_p12 }
 0x553   : > { %p1479_p4 = pnand %p1478_p2, %p1474_p13 }
 0x555   : > { %1482 = shalt.err (!%p1479_p4)
}
 0x556   : > { %s1560_s27 = smov 128   ;;  %s1561_s30 = smov 8  }
 0x557   : > { %1292 = dma.vmem_to_hbm [thread:$0]  (%p1631_p3), %s1952_s6, 1024, %s1949_s5, %s1956_s7, %s1560_s27, %s1560_s27, %s1561_s30  }
 0x558 PF: > { %p1298_p5 = scmp.ge.s32.totalorder %s1549_s19, 2  ;;  %s1101_s4 = sand.u32 1, %s1521_s12  }
 0x559   : > { %s1102_s8 = scalar_lea.sflag [#allocation6], %s1101_s4 }
 0x55a   : > { %p1295_p6 = pnand %p1298_p5, %p1641_p9 }
 0x55c   : > { %p1296_p7 = pneg %p1295_p6 }
 0x55e   : > { %1516 = dma.done.wait (%p1296_p7), %s1102_s8, 1024  }
 0x55f   : > { %1518 = vsyncadd (%p1296_p7), %s1102_s8, 4294966272  ;;  %s16_s19 = sadd.s32 1, %s1549_s19   ;;  %s2013_s12 = smov %s1525_s13 }
 0x560   : > { %p13_p8 = scmp.ge.s32.totalorder %s16_s19, 6   ;;  %s2014_s13 = smov %s1529_s14 }
 0x561   : > { %s2015_s14 = smov %s1649_s28  ;;  %s2016_s15 = smov %s1541_s17 }
 0x562   : > { %s2017_s16 = smov %s1545_s18  ;;  %s2018_s17 = smov %s2021_s22 }
 0x563   : > { %s2019_s18 = smov %s2025_s23  ;;  %15 = sbr.rel (!%p13_p8) target bundleno = 5 (0x5), region = 75 }
 0x568   :  { %1107 = vsyncpa [#allocation6], 1 }
 0x569   :  { %1109 = vsyncpa [#allocation6 + $0x1], 1 }

</bundles_post_ra>
